<compile_context>
chip_gen: v7x
topology: tpu7x:2x2x1
jax: 0.10.0
libtpu: 0.0.40
codegen_flags: <defaults>
</compile_context>

<pallas_src>
import functools

import jax
import jax.numpy as jnp
from jax.experimental import pallas as pl
from jax.experimental.pallas import tpu as pltpu


def _cdiv(a, b):
    return -(-a // b)


def _round_up(x, m):
    return _cdiv(x, m) * m


def _elu(v):
    # F.elu(alpha=1) with finite intermediates (exp only sees v <= 0); ELU(0)=0
    # keeps zero-padded lanes exactly 0.
    return jnp.where(v > 0, v, jnp.exp(jnp.minimum(v, 0.0)) - 1.0)


def _softplus(v):
    # Numerically-stable single-exp softplus: max(v,0) + log(1 + exp(-|v|)).
    return jnp.maximum(v, 0.0) + jnp.log(1.0 + jnp.exp(-jnp.abs(v)))


def actor_kernel(x_ref, w_ref, out_ref, *, layout, d_in_p, hidden_p, out_cols,
                 action_size, compute_dtype, mean_scale, init_std, min_std):
    f32 = jnp.float32
    Hp = hidden_p

    def wslab(name, rows, cols):
        off = layout[name]                      # static Python int -> free view
        return w_ref[off:off + rows, 0:cols]    # tile-aligned, full-lane load

    def bias(name, cols):
        off = layout[name]
        return w_ref[off:off + 1, 0:cols].astype(f32)   # (1, cols) broadcast add

    # bf16 operands, f32 MXU accumulation; activations / transcendentals in f32.
    x = x_ref[...].astype(compute_dtype)
    h = _elu(jnp.dot(x, wslab("w1", d_in_p, Hp), preferred_element_type=f32)
             + bias("b1", Hp))
    for l in ("2", "3", "4"):
        h = _elu(jnp.dot(h.astype(compute_dtype), wslab("w" + l, Hp, Hp),
                         preferred_element_type=f32)
                 + bias("b" + l, Hp))
    a = (jnp.dot(h.astype(compute_dtype), wslab("w5", Hp, out_cols),
                 preferred_element_type=f32)
         + bias("b5", out_cols))                # (TB, out_cols)

    # mean in lanes [0:A], std in lanes [A:2A]; one full-lane unmasked store,
    # the wrapper slices the real columns out.
    inv_scale = 1.0 / mean_scale
    mean_t = mean_scale * jnp.tanh(a * inv_scale)
    std_t = _softplus(a + init_std) + min_std
    col = jax.lax.broadcasted_iota(jnp.int32, a.shape, 1)
    out_ref[...] = jnp.where(col < action_size, mean_t, std_t)


def pack_actor_params(params, *, belief_size, state_size, hidden_size,
                      action_size, param_dtype=jnp.bfloat16):
    """Pack (w1,b1,...,w5,b5) into one (R, COLS) buffer of `param_dtype`.

    Weights are (in, out); biases are (1, out).  Every layer dim is zero-padded
    to a multiple of 128 lanes and every slab starts on a tile-aligned row so
    every in-kernel slice / matmul is full-lane.
    INVARIANT: padded weight columns and bias lanes are exactly 0, so padded
    activation lanes stay 0 through bias-add + ELU (ELU(0) == 0).
    """
    arrs = [jnp.asarray(p, jnp.float32) for p in params]
    w1, b1, w2, b2, w3, b3, w4, b4, w5, b5 = arrs
    d_in = belief_size + state_size
    d_in_p = _round_up(d_in, 128)
    hidden_p = _round_up(hidden_size, 128)
    out_cols = _round_up(2 * action_size, 128)
    cols = max(hidden_p, out_cols)
    # (8,128) tiles for f32, (16,128) for bf16 -> slab row alignment.
    align = 8 if jnp.dtype(param_dtype).itemsize >= 4 else 16

    entries = [
        ("w1", w1, d_in_p), ("b1", b1, align),
        ("w2", w2, hidden_p), ("b2", b2, align),
        ("w3", w3, hidden_p), ("b3", b3, align),
        ("w4", w4, hidden_p), ("b4", b4, align),
        ("w5", w5, hidden_p), ("b5", b5, align),
    ]
    layout, slabs, off = {}, [], 0
    for name, arr, rows in entries:
        buf = jnp.zeros((rows, cols), jnp.float32)
        buf = buf.at[:arr.shape[0], :arr.shape[1]].set(arr)
        slabs.append(buf)
        layout[name] = off
        off += rows
    packed = jnp.concatenate(slabs, axis=0).astype(param_dtype)
    meta = dict(layout=layout, d_in=d_in, d_in_p=d_in_p, hidden_p=hidden_p,
                out_cols=out_cols, hidden_size=hidden_size,
                action_size=action_size,
                belief_size=belief_size, state_size=state_size)
    return packed, meta


def actor_forward(belief, state, packed, meta, *,
                  mean_scale=5.0, init_std=0.0, min_std=0.1,
                  batch_tile=512, min_grid_steps=1):
    """Pallas implementation of ActorModel.forward -> (action_mean, action_std)."""
    belief = jnp.asarray(belief, jnp.float32)
    state = jnp.asarray(state, jnp.float32)
    B = belief.shape[0]
    A = meta["action_size"]
    d_in, d_in_p = meta["d_in"], meta["d_in_p"]
    out_cols = meta["out_cols"]

    # Batch tiling: Bp hugs B (no 2x padding blow-up).  min_grid_steps >= 2 can
    # be passed on v7x so the "parallel" axis shards across both TensorCores.
    n_tiles = max(_cdiv(B, batch_tile), min_grid_steps, 1)
    n_tiles = min(n_tiles, max(_cdiv(B, 8), 1))
    TB = _round_up(_cdiv(B, n_tiles), 8)
    Bp = _round_up(B, TB)
    grid = Bp // TB

    # Single lane-dense fc1 input: [belief | state | zeros] -> (Bp, d_in_p).
    x = jnp.concatenate([belief, state], axis=1)
    x = jnp.pad(x, ((0, Bp - B), (0, d_in_p - d_in)))

    kernel = functools.partial(
        actor_kernel,
        layout=meta["layout"], d_in_p=d_in_p, hidden_p=meta["hidden_p"],
        out_cols=out_cols, action_size=A, compute_dtype=packed.dtype,
        mean_scale=float(mean_scale), init_std=float(init_std),
        min_std=float(min_std))

    R, COLS = packed.shape
    w_bytes = int(packed.size) * packed.dtype.itemsize
    x_bytes = TB * d_in_p * 4
    o_bytes = TB * out_cols * 4
    vmem_limit = int(min(100 * (1 << 20),
                         max(2 * (w_bytes + x_bytes + o_bytes) + (8 << 20),
                             32 * (1 << 20))))

    out = pl.pallas_call(
        kernel,
        out_shape=jax.ShapeDtypeStruct((Bp, out_cols), jnp.float32),
        grid=(grid,),
        in_specs=[
            pl.BlockSpec((TB, d_in_p), lambda i: (i, 0)),
            # one packed-params DMA; constant block index -> VMEM-resident
            # across the whole batch grid.
            pl.BlockSpec((R, COLS), lambda i: (0, 0)),
        ],
        out_specs=pl.BlockSpec((TB, out_cols), lambda i: (i, 0)),
        compiler_params=pltpu.CompilerParams(
            dimension_semantics=("parallel",),
            vmem_limit_bytes=vmem_limit),
    )(x, packed)

    return out[:B, :A], out[:B, A:2 * A]


def init_params(key, belief_size, state_size, hidden_size, action_size):
    """Deterministic synthetic parameters. Weights stored as (in, out)."""
    dims = [
        (belief_size + state_size, hidden_size),
        (hidden_size, hidden_size),
        (hidden_size, hidden_size),
        (hidden_size, hidden_size),
        (hidden_size, 2 * action_size),
    ]
    params = []
    for fan_in, fan_out in dims:
        kw, kb, key = jax.random.split(key, 3)
        bound = 1.0 / float(fan_in) ** 0.5
        w = jax.random.uniform(kw, (fan_in, fan_out), jnp.float32, -bound, bound)
        b = jax.random.uniform(kb, (1, fan_out), jnp.float32, -bound, bound)
        params += [w, b]
    return tuple(params)


if __name__ == "__main__":
    # Small shapes consistent with the module's forward.
    batch = 2
    belief_size = 24
    state_size = 8
    hidden_size = 32
    action_size = 4
    mean_scale, init_std, min_std = 5.0, 0.0, 0.1

    key = jax.random.PRNGKey(0)
    kb, ks, kp = jax.random.split(key, 3)
    belief = jax.random.normal(kb, (batch, belief_size), jnp.float32)
    state = jax.random.normal(ks, (batch, state_size), jnp.float32)
    params = init_params(kp, belief_size, state_size, hidden_size, action_size)

    # Pack once (param-prep time), reuse across calls.
    packed, meta = pack_actor_params(
        params, belief_size=belief_size, state_size=state_size,
        hidden_size=hidden_size, action_size=action_size)

    mean, std = actor_forward(belief, state, packed, meta,
                              mean_scale=mean_scale, init_std=init_std,
                              min_std=min_std)
    jax.block_until_ready((mean, std))

    # Pure-JAX reference with the same mixed-precision policy as the kernel
    # (bf16 matmul operands, f32 accumulation, f32 ELU/tanh/softplus).
    def ref(belief, state, params, op_dtype):
        (w1, b1, w2, b2, w3, b3, w4, b4, w5, b5) = params

        def lin(h, w, b):
            wq = jnp.asarray(w, jnp.float32).astype(op_dtype)
            bq = jnp.asarray(b, jnp.float32).astype(op_dtype).astype(jnp.float32)
            return jnp.dot(h.astype(op_dtype), wq,
                           preferred_element_type=jnp.float32) + bq

        x = jnp.concatenate([belief, state], axis=1)
        h = jax.nn.elu(lin(x, w1, b1))
        h = jax.nn.elu(lin(h, w2, b2))
        h = jax.nn.elu(lin(h, w3, b3))
        h = jax.nn.elu(lin(h, w4, b4))
        a = lin(h, w5, b5)
        m, s = a[:, :action_size], a[:, action_size:]
        return (mean_scale * jnp.tanh(m / mean_scale),
                jax.nn.softplus(s + init_std) + min_std)

    rm, rs = ref(belief, state, params, packed.dtype)
    assert mean.shape == (batch, action_size) and std.shape == (batch, action_size)
    assert jnp.allclose(mean, rm, atol=5e-3, rtol=5e-3), "mean mismatch"
    assert jnp.allclose(std, rs, atol=5e-3, rtol=5e-3), "std mismatch"

    print("KERNEL_OK")
</pallas_src>

<mosaic_0001>
module attributes {stable_mosaic.version = 11 : i64} {
  func.func @actor_kernel(%arg0: i32, %arg1: memref<8x128xf32, #tpu.memory_space<vmem>>, %arg2: memref<720x128xbf16, #tpu.memory_space<vmem>>, %arg3: memref<8x128xf32, #tpu.memory_space<vmem>>) attributes {dimension_semantics = [#tpu.dimension_semantics<parallel>], iteration_bounds = array<i64: 1>, scalar_prefetch = 0 : i64, scratch_operands = 0 : i64, tpu.core_type = #tpu.core_type<tc>, window_params = [{transform_indices = @transform_0, window_bounds = array<i64: 8, 128>}, {pipeline_mode = #tpu.pipeline_mode<synchronous>, transform_indices = @transform_1, window_bounds = array<i64: 720, 128>}, {transform_indices = @transform_2, window_bounds = array<i64: 8, 128>}]} {
    %c0 = arith.constant 0 : index
    %c0_0 = arith.constant 0 : index
    %0 = vector.load %arg1[%c0, %c0_0] : memref<8x128xf32, #tpu.memory_space<vmem>>, vector<8x128xf32>
    %1 = arith.truncf %0 : vector<8x128xf32> to vector<8x128xbf16>
    %c0_1 = arith.constant 0 : index
    %c0_2 = arith.constant 0 : index
    %2 = vector.load %arg2[%c0_1, %c0_2] : memref<720x128xbf16, #tpu.memory_space<vmem>>, vector<128x128xbf16>
    %cst = arith.constant dense<0.000000e+00> : vector<8x128xf32>
    %3 = tpu.matmul %1, %2, %cst {dimension_numbers = #tpu.dot_dimension_numbers<[1], [0], [0], [1], [0, 0, 1, 1], [], []>} : vector<8x128xbf16>, vector<128x128xbf16>, vector<8x128xf32> -> vector<8x128xf32>
    %c128 = arith.constant 128 : index
    %c0_3 = arith.constant 0 : index
    %4 = vector.load %arg2[%c128, %c0_3] : memref<720x128xbf16, #tpu.memory_space<vmem>>, vector<1x128xbf16>
    %5 = arith.extf %4 : vector<1x128xbf16> to vector<1x128xf32>
    %6 = vector.broadcast %5 : vector<1x128xf32> to vector<8x128xf32>
    %7 = arith.addf %3, %6 : vector<8x128xf32>
    %cst_4 = arith.constant 0.000000e+00 : f32
    %8 = vector.broadcast %cst_4 : f32 to vector<8x128xf32>
    %9 = arith.cmpf ogt, %7, %8 : vector<8x128xf32>
    %cst_5 = arith.constant 0.000000e+00 : f32
    %10 = vector.broadcast %cst_5 : f32 to vector<8x128xf32>
    %11 = arith.minimumf %7, %10 : vector<8x128xf32>
    %12 = math.exp %11 : vector<8x128xf32>
    %cst_6 = arith.constant 1.000000e+00 : f32
    %13 = vector.broadcast %cst_6 : f32 to vector<8x128xf32>
    %14 = arith.subf %12, %13 : vector<8x128xf32>
    %15 = arith.select %9, %7, %14 : vector<8x128xi1>, vector<8x128xf32>
    %16 = arith.truncf %15 : vector<8x128xf32> to vector<8x128xbf16>
    %c144 = arith.constant 144 : index
    %c0_7 = arith.constant 0 : index
    %17 = vector.load %arg2[%c144, %c0_7] : memref<720x128xbf16, #tpu.memory_space<vmem>>, vector<128x128xbf16>
    %cst_8 = arith.constant dense<0.000000e+00> : vector<8x128xf32>
    %18 = tpu.matmul %16, %17, %cst_8 {dimension_numbers = #tpu.dot_dimension_numbers<[1], [0], [0], [1], [0, 0, 1, 1], [], []>} : vector<8x128xbf16>, vector<128x128xbf16>, vector<8x128xf32> -> vector<8x128xf32>
    %c272 = arith.constant 272 : index
    %c0_9 = arith.constant 0 : index
    %19 = vector.load %arg2[%c272, %c0_9] : memref<720x128xbf16, #tpu.memory_space<vmem>>, vector<1x128xbf16>
    %20 = arith.extf %19 : vector<1x128xbf16> to vector<1x128xf32>
    %21 = vector.broadcast %20 : vector<1x128xf32> to vector<8x128xf32>
    %22 = arith.addf %18, %21 : vector<8x128xf32>
    %cst_10 = arith.constant 0.000000e+00 : f32
    %23 = vector.broadcast %cst_10 : f32 to vector<8x128xf32>
    %24 = arith.cmpf ogt, %22, %23 : vector<8x128xf32>
    %cst_11 = arith.constant 0.000000e+00 : f32
    %25 = vector.broadcast %cst_11 : f32 to vector<8x128xf32>
    %26 = arith.minimumf %22, %25 : vector<8x128xf32>
    %27 = math.exp %26 : vector<8x128xf32>
    %cst_12 = arith.constant 1.000000e+00 : f32
    %28 = vector.broadcast %cst_12 : f32 to vector<8x128xf32>
    %29 = arith.subf %27, %28 : vector<8x128xf32>
    %30 = arith.select %24, %22, %29 : vector<8x128xi1>, vector<8x128xf32>
    %31 = arith.truncf %30 : vector<8x128xf32> to vector<8x128xbf16>
    %c288 = arith.constant 288 : index
    %c0_13 = arith.constant 0 : index
    %32 = vector.load %arg2[%c288, %c0_13] : memref<720x128xbf16, #tpu.memory_space<vmem>>, vector<128x128xbf16>
    %cst_14 = arith.constant dense<0.000000e+00> : vector<8x128xf32>
    %33 = tpu.matmul %31, %32, %cst_14 {dimension_numbers = #tpu.dot_dimension_numbers<[1], [0], [0], [1], [0, 0, 1, 1], [], []>} : vector<8x128xbf16>, vector<128x128xbf16>, vector<8x128xf32> -> vector<8x128xf32>
    %c416 = arith.constant 416 : index
    %c0_15 = arith.constant 0 : index
    %34 = vector.load %arg2[%c416, %c0_15] : memref<720x128xbf16, #tpu.memory_space<vmem>>, vector<1x128xbf16>
    %35 = arith.extf %34 : vector<1x128xbf16> to vector<1x128xf32>
    %36 = vector.broadcast %35 : vector<1x128xf32> to vector<8x128xf32>
    %37 = arith.addf %33, %36 : vector<8x128xf32>
    %cst_16 = arith.constant 0.000000e+00 : f32
    %38 = vector.broadcast %cst_16 : f32 to vector<8x128xf32>
    %39 = arith.cmpf ogt, %37, %38 : vector<8x128xf32>
    %cst_17 = arith.constant 0.000000e+00 : f32
    %40 = vector.broadcast %cst_17 : f32 to vector<8x128xf32>
    %41 = arith.minimumf %37, %40 : vector<8x128xf32>
    %42 = math.exp %41 : vector<8x128xf32>
    %cst_18 = arith.constant 1.000000e+00 : f32
    %43 = vector.broadcast %cst_18 : f32 to vector<8x128xf32>
    %44 = arith.subf %42, %43 : vector<8x128xf32>
    %45 = arith.select %39, %37, %44 : vector<8x128xi1>, vector<8x128xf32>
    %46 = arith.truncf %45 : vector<8x128xf32> to vector<8x128xbf16>
    %c432 = arith.constant 432 : index
    %c0_19 = arith.constant 0 : index
    %47 = vector.load %arg2[%c432, %c0_19] : memref<720x128xbf16, #tpu.memory_space<vmem>>, vector<128x128xbf16>
    %cst_20 = arith.constant dense<0.000000e+00> : vector<8x128xf32>
    %48 = tpu.matmul %46, %47, %cst_20 {dimension_numbers = #tpu.dot_dimension_numbers<[1], [0], [0], [1], [0, 0, 1, 1], [], []>} : vector<8x128xbf16>, vector<128x128xbf16>, vector<8x128xf32> -> vector<8x128xf32>
    %c560 = arith.constant 560 : index
    %c0_21 = arith.constant 0 : index
    %49 = vector.load %arg2[%c560, %c0_21] : memref<720x128xbf16, #tpu.memory_space<vmem>>, vector<1x128xbf16>
    %50 = arith.extf %49 : vector<1x128xbf16> to vector<1x128xf32>
    %51 = vector.broadcast %50 : vector<1x128xf32> to vector<8x128xf32>
    %52 = arith.addf %48, %51 : vector<8x128xf32>
    %cst_22 = arith.constant 0.000000e+00 : f32
    %53 = vector.broadcast %cst_22 : f32 to vector<8x128xf32>
    %54 = arith.cmpf ogt, %52, %53 : vector<8x128xf32>
    %cst_23 = arith.constant 0.000000e+00 : f32
    %55 = vector.broadcast %cst_23 : f32 to vector<8x128xf32>
    %56 = arith.minimumf %52, %55 : vector<8x128xf32>
    %57 = math.exp %56 : vector<8x128xf32>
    %cst_24 = arith.constant 1.000000e+00 : f32
    %58 = vector.broadcast %cst_24 : f32 to vector<8x128xf32>
    %59 = arith.subf %57, %58 : vector<8x128xf32>
    %60 = arith.select %54, %52, %59 : vector<8x128xi1>, vector<8x128xf32>
    %61 = arith.truncf %60 : vector<8x128xf32> to vector<8x128xbf16>
    %c576 = arith.constant 576 : index
    %c0_25 = arith.constant 0 : index
    %62 = vector.load %arg2[%c576, %c0_25] : memref<720x128xbf16, #tpu.memory_space<vmem>>, vector<128x128xbf16>
    %cst_26 = arith.constant dense<0.000000e+00> : vector<8x128xf32>
    %63 = tpu.matmul %61, %62, %cst_26 {dimension_numbers = #tpu.dot_dimension_numbers<[1], [0], [0], [1], [0, 0, 1, 1], [], []>} : vector<8x128xbf16>, vector<128x128xbf16>, vector<8x128xf32> -> vector<8x128xf32>
    %c704 = arith.constant 704 : index
    %c0_27 = arith.constant 0 : index
    %64 = vector.load %arg2[%c704, %c0_27] : memref<720x128xbf16, #tpu.memory_space<vmem>>, vector<1x128xbf16>
    %65 = arith.extf %64 : vector<1x128xbf16> to vector<1x128xf32>
    %66 = vector.broadcast %65 : vector<1x128xf32> to vector<8x128xf32>
    %67 = arith.addf %63, %66 : vector<8x128xf32>
    %cst_28 = arith.constant 2.000000e-01 : f32
    %68 = vector.broadcast %cst_28 : f32 to vector<8x128xf32>
    %69 = arith.mulf %67, %68 : vector<8x128xf32>
    %70 = math.tanh %69 : vector<8x128xf32>
    %cst_29 = arith.constant 5.000000e+00 : f32
    %71 = vector.broadcast %cst_29 : f32 to vector<8x128xf32>
    %72 = arith.mulf %71, %70 : vector<8x128xf32>
    %cst_30 = arith.constant 0.000000e+00 : f32
    %73 = vector.broadcast %cst_30 : f32 to vector<8x128xf32>
    %74 = arith.addf %67, %73 : vector<8x128xf32>
    %cst_31 = arith.constant 0.000000e+00 : f32
    %75 = vector.broadcast %cst_31 : f32 to vector<8x128xf32>
    %76 = arith.maximumf %74, %75 : vector<8x128xf32>
    %77 = math.absf %74 : vector<8x128xf32>
    %cst_32 = arith.constant 0.000000e+00 : f32
    %78 = vector.broadcast %cst_32 : f32 to vector<8x128xf32>
    %79 = arith.subf %78, %77 : vector<8x128xf32>
    %80 = math.exp %79 : vector<8x128xf32>
    %cst_33 = arith.constant 1.000000e+00 : f32
    %81 = vector.broadcast %cst_33 : f32 to vector<8x128xf32>
    %82 = arith.addf %81, %80 : vector<8x128xf32>
    %83 = math.log %82 : vector<8x128xf32>
    %84 = arith.addf %76, %83 : vector<8x128xf32>
    %cst_34 = arith.constant 1.000000e-01 : f32
    %85 = vector.broadcast %cst_34 : f32 to vector<8x128xf32>
    %86 = arith.addf %84, %85 : vector<8x128xf32>
    %87 = tpu.iota {dimensions = array<i32: 1>} : vector<8x128xi32>
    %c4_i32 = arith.constant 4 : i32
    %88 = vector.broadcast %c4_i32 : i32 to vector<8x128xi32>
    %89 = arith.cmpi slt, %87, %88 : vector<8x128xi32>
    %90 = arith.select %89, %72, %86 : vector<8x128xi1>, vector<8x128xf32>
    %c0_35 = arith.constant 0 : index
    %c0_36 = arith.constant 0 : index
    %91 = vector.load %arg3[%c0_35, %c0_36] : memref<8x128xf32, #tpu.memory_space<vmem>>, vector<8x128xf32>
    tpu.vector_store %arg3[%c0_35, %c0_36], %90 {strides = array<i32>} : memref<8x128xf32, #tpu.memory_space<vmem>>, vector<8x128xf32>,
    return
  }
  func.func @transform_0(%arg0: i32) -> (i32, i32) {
    %c0_i32 = arith.constant 0 : i32
    %c0_i32_0 = arith.constant 0 : i32
    return %arg0, %c0_i32 : i32, i32
  }
  func.func @transform_1(%arg0: i32) -> (i32, i32) {
    %c0_i32 = arith.constant 0 : i32
    %c0_i32_0 = arith.constant 0 : i32
    %c0_i32_1 = arith.constant 0 : i32
    return %c0_i32, %c0_i32_0 : i32, i32
  }
  func.func @transform_2(%arg0: i32) -> (i32, i32) {
    %c0_i32 = arith.constant 0 : i32
    %c0_i32_0 = arith.constant 0 : i32
    return %arg0, %c0_i32 : i32, i32
  }
}

</mosaic_0001>

<bundles_post_ra>
// kernel: tpu_custom_call.1
= control target key start
LH: loop header
LB: loop body
LE: loop exit
PB: predicated region body
PF: predicated region fallthrough
CT: control target
= control target key end

     0   :  { %7 = vsyncpa [#allocation3], 0  ;;  %s1100_s0 = inlined_call_operand.hbm [shape: f32[8,128], index: 0, kind: input, shape index: {}]   ;;  %s1101_s1 = inlined_call_operand.hbm [shape: bf16[720,128], index: 1, kind: input, shape index: {}]   ;;  %s1102_s2 = inlined_call_operand.hbm [shape: f32[8,128], index: 2, kind: output, shape index: {}]  }
   0x1   :  { %8 = vsyncpa [#allocation6], 0 }
   0x2   :  { %9 = vsyncpa [#allocation4], 0  ;;  %s976_s9 = smov [#allocation2]   ;;  %s977_s11 = smov [#allocation5]  }
   0x3   :  { %s16_s10 = sshll.u32 %s976_s9, 4  ;;  %s25_s12 = sshll.u32 %s977_s11, 4  ;;  %s17_s10 = int_to_ptr.vmem [resolvable:$true] %s16_s10  ;;  %s998_s12 = int_to_ptr.vmem [resolvable:$true] %s25_s12 }
   0x4   :  { %s904_s15 = scalar_lea.hbm %s1100_s0, 128 }
   0x5   :  { %p905_p0 = scmp.ne.s32.totalorder %s1100_s0, %s904_s15  ;;  %p908_p1 = scmp.lt.u32.totalorder %s904_s15, %s1100_s0 }
   0x7   :  { %p910_p2 = pnand %p908_p1, %p905_p0 }
   0x9   :  { %913 = shalt.err (!%p910_p2)
}
   0xa   :  { %s914_s20 = scalar_lea.vmem %s17_s10, 128  ;;  %p919_p4 = scmp.lt.s32.totalorder %s17_s10, %s17_s10 }
   0xb   :  { %p915_p3 = scmp.ne.s32.totalorder %s17_s10, %s914_s20  ;;  %p920_p5 = scmp.lt.s32.totalorder %s914_s20, %s914_s20 }
   0xd   :  { %p921_p6 = por %p920_p5, %p919_p4 }
   0xf   :  { %p922_p7 = pnand %p921_p6, %p915_p3 }
  0x11   :  { %925 = shalt.err (!%p922_p7)
}
  0x12   :  { %19 = dma.hbm_to_vmem [thread:$0]  %s1100_s0, 128, %s17_s10, [#allocation3]  }
  0x13   :  { %s926_s25 = scalar_lea.hbm %s1101_s1, 5760 }
  0x14   :  { %p927_p8 = scmp.ne.s32.totalorder %s1101_s1, %s926_s25  ;;  %p930_p9 = scmp.lt.u32.totalorder %s926_s25, %s1101_s1 }
  0x16   :  { %p932_p10 = pnand %p930_p9, %p927_p8 }
  0x18   :  { %935 = shalt.err (!%p932_p10)
}
  0x19   :  { %s936_s30 = scalar_lea.vmem %s998_s12, 5760  ;;  %p941_p12 = scmp.lt.s32.totalorder %s998_s12, %s998_s12 }
  0x1a   :  { %p937_p11 = scmp.ne.s32.totalorder %s998_s12, %s936_s30  ;;  %p942_p13 = scmp.lt.s32.totalorder %s936_s30, %s936_s30 }
  0x1c   :  { %p943_p0 = por %p942_p13, %p941_p12 }
  0x1e   :  { %p944_p1 = pnand %p943_p0, %p937_p11 }
  0x20   :  { %947 = shalt.err (!%p944_p1)
}
  0x21   :  { %s978_s0 = smov 64   ;;  %s979_s3 = smov 4  }
  0x22   :  { %31 = dma.hbm_to_vmem [thread:$0]  %s1101_s1, 5760, %s998_s12, [#allocation6], %s978_s0, %s978_s0, %s979_s3  }
  0x23   :  { %970 = dma.done.wait [#allocation3], 128  }
  0x24   :  { %971 = vsyncadd [#allocation3], 4294967168 }
  0x25   :  { %972 = dma.done.wait [#allocation6], 5760  }
  0x26   :  { %973 = vsyncadd [#allocation6], 4294961536  ;;  %v980_v0 = vmov 0.0   ;;  %vm981_vm0 = vmmov 0   ;;  %v850_v1 = vld [vmem:[#allocation5] sm:$0xff]   ;;  %v851_v2 = vld [vmem:[#allocation5 + $0x8] sm:$0xff]   ;;  %v59_v21 = vlaneseq }
  0x27   :  { %743 = vmatprep.subr.bf16.mxu0 %v980_v0  ;;  %759 = vmatprep.mubr.msk.bf16.mxu0 %vm981_vm0, %v980_v0  ;;  %v852_v3 = vld [vmem:[#allocation5 + $0x10] sm:$0xff]   ;;  %v858_v4 = vld [vmem:[#allocation5 + $0x48] sm:$0xff]   ;;  %v853_v5 = vld [vmem:[#allocation5 + $0x18] sm:$0xff]   ;;  %s982_s1 = smov [#allocation7]  }
  0x28   :  { %763 = vmatprep.subr.bf16.mxu1 %v980_v0  ;;  %779 = vmatprep.mubr.msk.bf16.mxu1 %vm981_vm0, %v980_v0  ;;  %v859_v6 = vld [vmem:[#allocation5 + $0x50] sm:$0xff]   ;;  %v854_v7 = vld [vmem:[#allocation5 + $0x20] sm:$0xff]   ;;  %v855_v8 = vld [vmem:[#allocation5 + $0x28] sm:$0xff]   ;;  %v60_v22 = vshrl.u32 %v59_v21, 7  ;;  %s644_s6 = sshll.u32 %s982_s1, 4  ;;  %s645_s6 = int_to_ptr.vmem [resolvable:$true] %s644_s6 }
  0x29   :  { %744 = vmatpush3.bf16.msra.mxu0 %v850_v1  ;;  %764 = vmatpush3.bf16.msra.mxu1 %v858_v4  ;;  %v856_v9 = vld [vmem:[#allocation5 + $0x30] sm:$0xff]   ;;  %v857_v10 = vld [vmem:[#allocation5 + $0x38] sm:$0xff]   ;;  %v861_v14 = vld [vmem:[#allocation5 + $0x60] sm:$0xff]   ;;  %s948_s7 = scalar_lea.vmem %s645_s6, 128  ;;  %p953_p3 = scmp.lt.s32.totalorder %s645_s6, %s645_s6 }
  0x2a   :  { %745 = vmatprep.subr.bf16.mxu0 %v980_v0  ;;  %765 = vmatprep.subr.bf16.mxu1 %v980_v0  ;;  %v39_v11 = vld [vmem:[#allocation2] sm:$0xff]  ;;  %v862_v15 = vld [vmem:[#allocation5 + $0x68] sm:$0xff]   ;;  %v863_v16 = vld [vmem:[#allocation5 + $0x70] sm:$0xff]   ;;  %v1056_v25 = vsub.s32 0, %v60_v22  ;;  %p949_p2 = scmp.ne.s32.totalorder %s645_s6, %s948_s7  ;;  %p954_p4 = scmp.lt.s32.totalorder %s948_s7, %s948_s7 }
  0x2b   :  { %v40_v12 = vpack.c.bf16 %v39_v11, %v39_v11  ;;  %v860_v13 = vld [vmem:[#allocation5 + $0x58] sm:$0xff]   ;;  %v865_v18 = vld [vmem:[#allocation5 + $0x80] sm:$0xff]   ;;  %v866_v19 = vld [vmem:[#allocation5 + $0x90] sm:$0xff]  }
  0x2c   :  { %v864_v17 = vld [vmem:[#allocation5 + $0x78] sm:$0xff]   ;;  %v57_v23 = vld [vmem:[#allocation5 + $0x40] sm:$0x1]  ;;  %v869_v39 = vld [vmem:[#allocation5 + $0xa8] sm:$0xff]   ;;  %p955_p5 = por %p954_p4, %p953_p3 }
  0x2d   :  { %746 = vmatpush3.bf16.msra.mxu0 %v851_v2  ;;  %766 = vmatpush3.bf16.msra.mxu1 %v859_v6  ;;  %v867_v20 = vld [vmem:[#allocation5 + $0x98] sm:$0xff]   ;;  %v58_v24 = vunpack.c.l.bf16 %v57_v23  ;;  %v868_v38 = vld [vmem:[#allocation5 + $0xa0] sm:$0xff]   ;;  %v870_v40 = vld [vmem:[#allocation5 + $0xb0] sm:$0xff]  }
  0x2e   :  { %747 = vmatprep.subr.bf16.mxu0 %v980_v0  ;;  %767 = vmatprep.subr.bf16.mxu1 %v980_v0  ;;  %v871_v41 = vld [vmem:[#allocation5 + $0xb8] sm:$0xff]   ;;  %v872_v42 = vld [vmem:[#allocation5 + $0xc0] sm:$0xff]   ;;  %v873_v43 = vld [vmem:[#allocation5 + $0xc8] sm:$0xff]   ;;  %p956_p6 = pnand %p955_p5, %p949_p2 }
  0x2f   :  { %v62_v26 = vrot.slane %v58_v24, %v1056_v25  ;;  %v874_v44 = vld [vmem:[#allocation5 + $0xd8] sm:$0xff]   ;;  %v875_v45 = vld [vmem:[#allocation5 + $0xe0] sm:$0xff]   ;;  %v174_v46 = vld [vmem:[#allocation5 + $0x88] sm:$0x1] }
  0x30   :  { %v175_v47 = vunpack.c.l.bf16 %v174_v46  ;;  %v876_v60 = vld [vmem:[#allocation5 + $0xe8] sm:$0xff]   ;;  %v877_v61 = vld [vmem:[#allocation5 + $0xf0] sm:$0xff]   ;;  %v878_v62 = vld [vmem:[#allocation5 + $0xf8] sm:$0xff]  }
  0x31   :  { %748 = vmatpush3.bf16.msra.mxu0 %v852_v3  ;;  %768 = vmatpush3.bf16.msra.mxu1 %v860_v13  ;;  %v879_v63 = vld [vmem:[#allocation5 + $0x100] sm:$0xff]   ;;  %v880_v1 = vld [vmem:[#allocation5 + $0x108] sm:$0xff]   ;;  %v881_v2 = vld [vmem:[#allocation5 + $0x110] sm:$0xff]  }
  0x32   :  { %749 = vmatprep.subr.bf16.mxu0 %v980_v0  ;;  %769 = vmatprep.subr.bf16.mxu1 %v980_v0  ;;  %v179_v48 = vrot.slane %v175_v47, %v1056_v25  ;;  %v882_v3 = vld [vmem:[#allocation5 + $0x120] sm:$0xff]   ;;  %v883_v4 = vld [vmem:[#allocation5 + $0x128] sm:$0xff]   ;;  %v888_v24 = vld [vmem:[#allocation5 + $0x150] sm:$0xff]  }
  0x33   :  { %v886_v22 = vld [vmem:[#allocation5 + $0x140] sm:$0xff]   ;;  %v887_v23 = vld [vmem:[#allocation5 + $0x148] sm:$0xff]  }
  0x35   :  { %750 = vmatpush3.bf16.msra.mxu0 %v853_v5  ;;  %770 = vmatpush3.bf16.msra.mxu1 %v861_v14  ;;  %v291_v5 = vld [vmem:[#allocation5 + $0xd0] sm:$0x1] }
  0x36   :  { %751 = vmatprep.subr.bf16.mxu0 %v980_v0  ;;  %771 = vmatprep.subr.bf16.mxu1 %v980_v0  ;;  %v292_v6 = vunpack.c.l.bf16 %v291_v5 }
  0x39   :  { %752 = vmatpush3.bf16.msra.mxu0 %v854_v7  ;;  %772 = vmatpush3.bf16.msra.mxu1 %v862_v15  ;;  %v296_v7 = vrot.slane %v292_v6, %v1056_v25 }
  0x3a   :  { %753 = vmatprep.subr.bf16.mxu0 %v980_v0  ;;  %773 = vmatprep.subr.bf16.mxu1 %v980_v0 }
  0x3d   :  { %754 = vmatpush3.bf16.msra.mxu0 %v855_v8  ;;  %774 = vmatpush3.bf16.msra.mxu1 %v863_v16 }
  0x3e   :  { %755 = vmatprep.subr.bf16.mxu0 %v980_v0  ;;  %775 = vmatprep.subr.bf16.mxu1 %v980_v0 }
  0x41   :  { %756 = vmatpush3.bf16.msra.mxu0 %v856_v9  ;;  %776 = vmatpush3.bf16.msra.mxu1 %v864_v17 }
  0x42   :  { %757 = vmatprep.subr.bf16.mxu0 %v980_v0  ;;  %777 = vmatprep.subr.bf16.mxu1 %v980_v0 }
  0x45   :  { %758 = vmatpush3.bf16.msra.mxu0 %v857_v10  ;;  %778 = vmatpush3.bf16.msra.mxu1 %v865_v18 }
  0x46   :  { %783 = vmatprep.subr.bf16.mxu0 %v980_v0  ;;  %803 = vmatprep.subr.bf16.mxu1 %v980_v0 }
  0x48   :  { %760 = vmatmul.mubr.bf16.vlgmr.msra.gmra.mrb[0].mxu0 %v40_v12 }
  0x49   :  { %799 = vmatprep.mubr.msk.bf16.mxu0 %vm981_vm0, %v980_v0  ;;  %784 = vmatpush3.bf16.msra.mxu0 %v866_v19  ;;  %v884_v19 = vld [vmem:[#allocation5 + $0x130] sm:$0xff]  }
  0x4a   :  { %785 = vmatprep.subr.bf16.mxu0 %v980_v0 }
  0x4d   :  { %786 = vmatpush3.bf16.msra.mxu0 %v867_v20  ;;  %v885_v20 = vld [vmem:[#allocation5 + $0x138] sm:$0xff]  }
  0x4e   :  { %787 = vmatprep.subr.bf16.mxu0 %v980_v0 }
  0x51   :  { %788 = vmatpush3.bf16.msra.mxu0 %v868_v38 }
  0x52   :  { %789 = vmatprep.subr.bf16.mxu0 %v980_v0 }
  0x55   :  { %790 = vmatpush3.bf16.msra.mxu0 %v869_v39 }
  0x56   :  { %791 = vmatprep.subr.bf16.mxu0 %v980_v0 }
  0x59   :  { %792 = vmatpush3.bf16.msra.mxu0 %v870_v40 }
  0x5a   :  { %793 = vmatprep.subr.bf16.mxu0 %v980_v0 }
  0x5d   :  { %794 = vmatpush3.bf16.msra.mxu0 %v871_v41 }
  0x5e   :  { %795 = vmatprep.subr.bf16.mxu0 %v980_v0 }
  0x61   :  { %796 = vmatpush3.bf16.msra.mxu0 %v872_v42 }
  0x62   :  { %797 = vmatprep.subr.bf16.mxu0 %v980_v0 }
  0x65   :  { %798 = vmatpush3.bf16.msra.mxu0 %v873_v43 }
  0x66   :  { %823 = vmatprep.subr.bf16.mxu0 %v980_v0 }
 0x11b   :  { %v145_v27 = vpop.f32.mrb[0].mxu0 }
 0x11c   :  { %v146_v28 = vadd.f32 %v145_v27, %v62_v26  ;;  %v761_v29 = vpop.f32.mrb[1].mxu0  ;;  %v889_v26 = vld [vmem:[#allocation5 + $0x158] sm:$0xff]  }
 0x11d   :  { %v148_v30 = vpop.f32.mrb[2].mxu0  ;;  %v408_v27 = vld [vmem:[#allocation5 + $0x118] sm:$0x1] }
 0x11e   :  { %v152_v31 = vmin.f32 %v146_v28, 0.0  ;;  %v762_v32 = vpop.f32.mrb[3].mxu0  ;;  %vm151_vm1 = vcmp.gt.f32.partialorder %v146_v28, 0.0 }
 0x120   :  { %v153_v33 = vmul.f32 1.442695, %v152_v31 }
 0x122   :  { %890 = vpow2.f32 %v153_v33 }
 0x12c   :  { %v891_v34 = vpop.eup %890 }
 0x12d   :  { %v662_v35 = vadd.f32 -1.0, %v891_v34 }
 0x12f   :  { %v156_v36 = vsel %vm151_vm1, %v146_v28, %v662_v35  ;;  %v409_v28 = vunpack.c.l.bf16 %v408_v27 }
 0x130   :  { %v157_v37 = vpack.c.bf16 %v156_v36, %v156_v36 }
 0x131   :  { %v413_v29 = vrot.slane %v409_v28, %v1056_v25 }
 0x132   :  { %780 = vmatmul.mubr.bf16.vlgmr.msra.gmra.mrb[0].mxu1 %v157_v37 }
 0x133   :  { %819 = vmatprep.mubr.msk.bf16.mxu1 %vm981_vm0, %v980_v0  ;;  %804 = vmatpush3.bf16.msra.mxu1 %v874_v44 }
 0x134   :  { %805 = vmatprep.subr.bf16.mxu1 %v980_v0 }
 0x137   :  { %806 = vmatpush3.bf16.msra.mxu1 %v875_v45 }
 0x138   :  { %807 = vmatprep.subr.bf16.mxu1 %v980_v0 }
 0x13b   :  { %808 = vmatpush3.bf16.msra.mxu1 %v876_v60 }
 0x13c   :  { %809 = vmatprep.subr.bf16.mxu1 %v980_v0 }
 0x13f   :  { %810 = vmatpush3.bf16.msra.mxu1 %v877_v61 }
 0x140   :  { %811 = vmatprep.subr.bf16.mxu1 %v980_v0 }
 0x143   :  { %812 = vmatpush3.bf16.msra.mxu1 %v878_v62 }
 0x144   :  { %813 = vmatprep.subr.bf16.mxu1 %v980_v0 }
 0x147   :  { %814 = vmatpush3.bf16.msra.mxu1 %v879_v63 }
 0x148   :  { %815 = vmatprep.subr.bf16.mxu1 %v980_v0 }
 0x14b   :  { %816 = vmatpush3.bf16.msra.mxu1 %v880_v1 }
 0x14c   :  { %817 = vmatprep.subr.bf16.mxu1 %v980_v0 }
 0x14f   :  { %818 = vmatpush3.bf16.msra.mxu1 %v881_v2 }
 0x205   :  { %v262_v49 = vpop.f32.mrb[0].mxu1 }
 0x206   :  { %v263_v50 = vadd.f32 %v262_v49, %v179_v48  ;;  %v781_v51 = vpop.f32.mrb[1].mxu1 }
 0x207   :  { %v265_v52 = vpop.f32.mrb[2].mxu1 }
 0x208   :  { %v269_v53 = vmin.f32 %v263_v50, 0.0  ;;  %v782_v54 = vpop.f32.mrb[3].mxu1  ;;  %vm268_vm2 = vcmp.gt.f32.partialorder %v263_v50, 0.0 }
 0x20a   :  { %v270_v55 = vmul.f32 1.442695, %v269_v53 }
 0x20c   :  { %892 = vpow2.f32 %v270_v55  ;;  %v634_v55 = vand.u32 127, %v59_v21 }
 0x20e   :  { %vm635_vm5 = vcmp.lt.s32.totalorder %v634_v55, 4 }
 0x216   :  { %v893_v56 = vpop.eup %892 }
 0x217   :  { %v671_v57 = vadd.f32 -1.0, %v893_v56 }
 0x219   :  { %v273_v58 = vsel %vm268_vm2, %v263_v50, %v671_v57 }
 0x21a   :  { %v274_v59 = vpack.c.bf16 %v273_v58, %v273_v58 }
 0x21c   :  { %800 = vmatmul.mubr.bf16.vlgmr.msra.gmra.mrb[4].mxu0 %v274_v59 }
 0x21d   :  { %839 = vmatprep.mubr.msk.bf16.mxu0 %vm981_vm0, %v980_v0  ;;  %824 = vmatpush3.bf16.msra.mxu0 %v882_v3 }
 0x21e   :  { %825 = vmatprep.subr.bf16.mxu0 %v980_v0 }
 0x221   :  { %826 = vmatpush3.bf16.msra.mxu0 %v883_v4 }
 0x222   :  { %827 = vmatprep.subr.bf16.mxu0 %v980_v0 }
 0x225   :  { %828 = vmatpush3.bf16.msra.mxu0 %v884_v19 }
 0x226   :  { %829 = vmatprep.subr.bf16.mxu0 %v980_v0 }
 0x229   :  { %830 = vmatpush3.bf16.msra.mxu0 %v885_v20 }
 0x22a   :  { %831 = vmatprep.subr.bf16.mxu0 %v980_v0 }
 0x22d   :  { %832 = vmatpush3.bf16.msra.mxu0 %v886_v22 }
 0x22e   :  { %833 = vmatprep.subr.bf16.mxu0 %v980_v0 }
 0x231   :  { %834 = vmatpush3.bf16.msra.mxu0 %v887_v23 }
 0x232   :  { %835 = vmatprep.subr.bf16.mxu0 %v980_v0 }
 0x235   :  { %836 = vmatpush3.bf16.msra.mxu0 %v888_v24 }
 0x236   :  { %837 = vmatprep.subr.bf16.mxu0 %v980_v0  ;;  %v525_v0 = vld [vmem:[#allocation5 + $0x160] sm:$0x1] }
 0x237   :  { %v526_v41 = vunpack.c.l.bf16 %v525_v0 }
 0x239   :  { %838 = vmatpush3.bf16.msra.mxu0 %v889_v26  ;;  %v530_v42 = vrot.slane %v526_v41, %v1056_v25 }
 0x2ef   :  { %v379_v8 = vpop.f32.mrb[4].mxu0 }
 0x2f0   :  { %v380_v9 = vadd.f32 %v379_v8, %v296_v7  ;;  %v801_v10 = vpop.f32.mrb[5].mxu0 }
 0x2f1   :  { %v382_v11 = vpop.f32.mrb[6].mxu0 }
 0x2f2   :  { %v386_v12 = vmin.f32 %v380_v9, 0.0  ;;  %v802_v13 = vpop.f32.mrb[7].mxu0  ;;  %vm385_vm3 = vcmp.gt.f32.partialorder %v380_v9, 0.0 }
 0x2f4   :  { %v387_v14 = vmul.f32 1.442695, %v386_v12 }
 0x2f6   :  { %894 = vpow2.f32 %v387_v14 }
 0x300   :  { %v895_v15 = vpop.eup %894 }
 0x301   :  { %v680_v16 = vadd.f32 -1.0, %v895_v15 }
 0x303   :  { %v390_v17 = vsel %vm385_vm3, %v380_v9, %v680_v16 }
 0x304   :  { %v391_v18 = vpack.c.bf16 %v390_v17, %v390_v17 }
 0x306   :  { %820 = vmatmul.mubr.bf16.vlgmr.msra.gmra.mrb[4].mxu1 %v391_v18 }
 0x3d9   :  { %v496_v30 = vpop.f32.mrb[4].mxu1 }
 0x3da   :  { %v497_v31 = vadd.f32 %v496_v30, %v413_v29  ;;  %v821_v32 = vpop.f32.mrb[5].mxu1 }
 0x3db   :  { %v499_v33 = vpop.f32.mrb[6].mxu1 }
 0x3dc   :  { %v503_v34 = vmin.f32 %v497_v31, 0.0  ;;  %v822_v35 = vpop.f32.mrb[7].mxu1  ;;  %vm502_vm4 = vcmp.gt.f32.partialorder %v497_v31, 0.0 }
 0x3de   :  { %v504_v36 = vmul.f32 1.442695, %v503_v34 }
 0x3e0   :  { %896 = vpow2.f32 %v504_v36 }
 0x3ea   :  { %v897_v37 = vpop.eup %896 }
 0x3eb   :  { %v689_v38 = vadd.f32 -1.0, %v897_v37 }
 0x3ed   :  { %v507_v39 = vsel %vm502_vm4, %v497_v31, %v689_v38 }
 0x3ee   :  { %v508_v40 = vpack.c.bf16 %v507_v39, %v507_v39 }
 0x3f0   :  { %840 = vmatmul.mubr.bf16.vlgmr.msra.gmra.mrb[8].mxu0 %v508_v40 }
 0x4c3   :  { %v613_v43 = vpop.f32.mrb[8].mxu0 }
 0x4c4   :  { %v614_v44 = vadd.f32 %v613_v43, %v530_v42  ;;  %v841_v45 = vpop.f32.mrb[9].mxu0 }
 0x4c5   :  { %v616_v46 = vpop.f32.mrb[10].mxu0 }
 0x4c6   :  { %v624_v47 = vand.u32 2147483647, %v614_v44  ;;  %v842_v48 = vpop.f32.mrb[11].mxu0  ;;  %v619_v52 = vmul.f32 0.2, %v614_v44  ;;  %v623_v56 = vmax.f32 %v614_v44, 0.0 }
 0x4c8   :  { %v625_v49 = vsub.f32 0.0, %v624_v47 }
 0x4ca   :  { %v626_v50 = vmul.f32 1.442695, %v625_v49 }
 0x4cc   :  { %898 = vpow2.f32 %v626_v50 }
 0x4d6   :  { %v899_v51 = vpop.eup %898 }
 0x4d7   :  { %v628_v53 = vadd.f32 1.0, %v899_v51 }
 0x4d9   :  { %900 = vlog2.f32 %v628_v53 }
 0x4da   :  { %902 = vtanh.f32 %v619_v52 }
 0x4e3   :  { %v901_v54 = vpop.eup %900 }
 0x4e4   :  { %v630_v57 = vmul.f32 0.6931472, %v901_v54  ;;  %v903_v25 = vpop.eup %902 }
 0x4e5   :  { %v621_v59 = vmul.f32 5.0, %v903_v25 }
 0x4e6   :  { %v631_v58 = vadd.f32 %v630_v57, %v623_v56 }
 0x4e8   :  { %v632_v60 = vadd.f32 0.1, %v631_v58 }
 0x4ea   :  { %v636_v61 = vsel %vm635_vm5, %v621_v59, %v632_v60 }
 0x4eb   :  { %637 = vst [vmem:[#allocation7] sm:$0xff] %v636_v61 }
 0x4ec   :  { %959 = shalt.err (!%p956_p6)
}
 0x4ed   :  { %s960_s10 = scalar_lea.hbm %s1102_s2, 128 }
 0x4ee   :  { %p961_p7 = scmp.ne.s32.totalorder %s1102_s2, %s960_s10  ;;  %p964_p8 = scmp.lt.u32.totalorder %s960_s10, %s1102_s2 }
 0x4f0   :  { %p966_p9 = pnand %p964_p8, %p961_p7 }
 0x4f2   :  { %969 = shalt.err (!%p966_p9)
}
 0x4f3   :  { %647 = dma.vmem_to_hbm [thread:$0]  %s645_s6, 128, %s1102_s2, [#allocation4]  }
 0x4f4   :  { %974 = dma.done.wait [#allocation4], 128  }
 0x4f5   :  { %975 = vsyncadd [#allocation4], 4294967168 }
 0x4f6   :  { %651 = vsyncpa [#allocation3], 1 }
 0x4f7   :  { %652 = vsyncpa [#allocation6], 1 }
 0x4f8   :  { %653 = vsyncpa [#allocation4], 1 }

</bundles_post_ra>
